<compile_context>
chip_gen: v7x
topology: tpu7x:2x2x1
jax: 0.10.0
libtpu: 0.0.40
codegen_flags: <defaults>
</compile_context>

<pallas_src>
import numpy as np
import jax
import jax.numpy as jnp
from jax.experimental import pallas as pl
from jax.experimental.pallas import tpu as pltpu


def _uniform_indices(t: int, num_samples: int) -> np.ndarray:
    """Replicates torch.linspace(0, t-1, n) -> clamp -> .long() (floor, x >= 0)."""
    idx = np.linspace(0.0, float(t - 1), num_samples)
    idx = np.clip(idx, 0.0, float(t - 1))
    return idx.astype(np.int32)


def _gather_kernel(idx_ref, x_ref, o_ref):
    # idx_ref: SMEM scalar-prefetch table (consumed by the index_maps, not here).
    # x_ref / o_ref: (C, 1, h_blk, W) VMEM blocks -> pure copy.
    del idx_ref
    o_ref[...] = x_ref[...]


def uniform_temporal_subsample(x: jnp.ndarray, num_samples: int) -> jnp.ndarray:
    """x: (C, T, H, W) -> (C, num_samples, H, W) (temporal_dim = -3, i.e. axis 1)."""
    assert x.ndim == 4, "expected (C, T, H, W)"
    c, t, h, w = x.shape
    assert num_samples > 0 and t > 0

    idx = _uniform_indices(t, num_samples)

    # VMEM budget: ~4 * block_bytes live (input + output, double-buffered each).
    dtype_bytes = jnp.dtype(x.dtype).itemsize
    budget = 8 << 20  # 8 MiB of blocks -> safe on every TPU generation
    if 4 * c * h * w * dtype_bytes <= budget:
        h_blk = h  # whole frame (all channels) per grid step
    else:
        h_blk = (budget // (4 * c * w * dtype_bytes)) // 8 * 8
        h_blk = int(max(8, min(h_blk, h)))

    grid = (num_samples, pl.cdiv(h, h_blk))

    out = pl.pallas_call(
        _gather_kernel,
        out_shape=jax.ShapeDtypeStruct((c, num_samples, h, w), x.dtype),
        grid_spec=pltpu.PrefetchScalarGridSpec(
            num_scalar_prefetch=1,
            grid=grid,
            in_specs=[
                # Data-dependent temporal gather: the block index along T comes
                # from the prefetched index table (SMEM ref, positional arg).
                pl.BlockSpec((c, 1, h_blk, w),
                             lambda s, hi, idx_ref: (0, idx_ref[s], hi, 0)),
            ],
            out_specs=pl.BlockSpec((c, 1, h_blk, w),
                                   lambda s, hi, idx_ref: (0, s, hi, 0)),
        ),
        compiler_params=pltpu.CompilerParams(
            dimension_semantics=("parallel", "parallel")),
    )(jnp.asarray(idx, dtype=jnp.int32), x)

    return out


if __name__ == "__main__":
    key = jax.random.PRNGKey(0)

    # Small (C, T, H, W) video.
    C, T, H, W = 3, 16, 16, 16
    x = jax.random.normal(key, (C, T, H, W), dtype=jnp.float32)

    # Case 1: downsample (num_samples < T).
    n1 = 8
    y1 = jax.block_until_ready(uniform_temporal_subsample(x, n1))
    ref1 = jnp.take(x, jnp.asarray(_uniform_indices(T, n1)), axis=1)
    assert y1.shape == (C, n1, H, W)
    assert np.array_equal(np.asarray(y1), np.asarray(ref1))

    # Case 2: num_samples > T (nearest-neighbor repetition of frames).
    n2 = 20
    y2 = jax.block_until_ready(uniform_temporal_subsample(x, n2))
    ref2 = jnp.take(x, jnp.asarray(_uniform_indices(T, n2)), axis=1)
    assert y2.shape == (C, n2, H, W)
    assert np.array_equal(np.asarray(y2), np.asarray(ref2))

    print("KERNEL_OK")
</pallas_src>

<mosaic_0001>
module attributes {stable_mosaic.version = 11 : i64} {
  func.func @_gather_kernel(%arg0: i32, %arg1: i32, %arg2: memref<8xi32, #tpu.memory_space<smem>>, %arg3: memref<3x1x16x16xf32, #tpu.memory_space<vmem>>, %arg4: memref<3x1x16x16xf32, #tpu.memory_space<vmem>>) attributes {dimension_semantics = [#tpu.dimension_semantics<parallel>, #tpu.dimension_semantics<parallel>], iteration_bounds = array<i64: 8, 1>, scalar_prefetch = 1 : i64, scratch_operands = 0 : i64, tpu.core_type = #tpu.core_type<tc>, window_params = [{transform_indices = @transform_0, window_bounds = array<i64: 3, 1, 16, 16>}, {transform_indices = @transform_1, window_bounds = array<i64: 3, 1, 16, 16>}]} {
    %c0 = arith.constant 0 : index
    %c0_0 = arith.constant 0 : index
    %c0_1 = arith.constant 0 : index
    %c0_2 = arith.constant 0 : index
    %0 = vector.load %arg3[%c0, %c0_0, %c0_1, %c0_2] : memref<3x1x16x16xf32, #tpu.memory_space<vmem>>, vector<3x1x16x16xf32>
    %c0_3 = arith.constant 0 : index
    %c0_4 = arith.constant 0 : index
    %c0_5 = arith.constant 0 : index
    %c0_6 = arith.constant 0 : index
    %1 = vector.load %arg4[%c0_3, %c0_4, %c0_5, %c0_6] : memref<3x1x16x16xf32, #tpu.memory_space<vmem>>, vector<3x1x16x16xf32>
    tpu.vector_store %arg4[%c0_3, %c0_4, %c0_5, %c0_6], %0 {strides = array<i32>} : memref<3x1x16x16xf32, #tpu.memory_space<vmem>>, vector<3x1x16x16xf32>,
    return
  }
  func.func @transform_0(%arg0: i32, %arg1: i32, %arg2: memref<8xi32, #tpu.memory_space<smem>>) -> (i32, i32, i32, i32) {
    %0 = arith.index_cast %arg0 : i32 to index
    %1 = memref.load %arg2[%0] : memref<8xi32, #tpu.memory_space<smem>>
    %c0_i32 = arith.constant 0 : i32
    %c0_i32_0 = arith.constant 0 : i32
    %c0_i32_1 = arith.constant 0 : i32
    return %c0_i32, %1, %arg1, %c0_i32_0 : i32, i32, i32, i32
  }
  func.func @transform_1(%arg0: i32, %arg1: i32, %arg2: memref<8xi32, #tpu.memory_space<smem>>) -> (i32, i32, i32, i32) {
    %c0_i32 = arith.constant 0 : i32
    %c0_i32_0 = arith.constant 0 : i32
    %c0_i32_1 = arith.constant 0 : i32
    return %c0_i32, %arg0, %arg1, %c0_i32_0 : i32, i32, i32, i32
  }
}

</mosaic_0001>

<bundles_post_ra>
// kernel: tpu_custom_call.1
= control target key start
LH: loop header
LB: loop body
LE: loop exit
PB: predicated region body
PF: predicated region fallthrough
CT: control target
= control target key end

     0   :  { %s762_s0 = inlined_call_operand.hbm [shape: s32[8], index: 0, kind: input, shape index: {}]   ;;  %s763_s1 = inlined_call_operand.hbm [shape: f32[3,16,16,16], index: 1, kind: input, shape index: {}]   ;;  %s764_s2 = inlined_call_operand.hbm [shape: f32[3,8,16,16], index: 2, kind: output, shape index: {}]  }
   0x1   :  { %s462_s11 = scalar_lea.hbm %s762_s0, 16 }
   0x2   :  { %p463_p0 = scmp.ne.s32.totalorder %s762_s0, %s462_s11  ;;  %p466_p1 = scmp.lt.u32.totalorder %s462_s11, %s762_s0 }
   0x4   :  { %p468_p2 = pnand %p466_p1, %p463_p0 }
   0x6   :  { %471 = shalt.err (!%p468_p2)  }
   0x7   :  { %s554_s16 = smov [#allocation3]  }
   0x8   :  { %8 = dma.hbm_to_smem %s762_s0, 16, %s554_s16, [#allocation2] }
   0x9   :  { %508 = dma.done.wait [#allocation2], 16 }
   0xa   :  { %509 = vsyncadd [#allocation2], 4294967280 }
   0xb   :  { %10 = sfence }
   0xc   :  { %11 = vsyncpa [#allocation5], 0 }
   0xd   :  { %13 = vsyncpa [#allocation5 + $0x1], 0 }
   0xe   :  { %14 = vsyncpa [#allocation6], 0 }
   0xf   :  { %16 = vsyncpa [#allocation6 + $0x1], 0  ;;  %s595_s19 = smov 0   ;;  %s597_s20 = smov 0  }
  0x10   :  { %s599_s21 = smov 0   ;;  %s601_s22 = smov 0  }
  0x11   :  { %s603_s23 = smov 0   ;;  %s605_s24 = smov 0  }
  0x12   :  { %s607_s0 = smov 0   ;;  %s609_s25 = smov 0  }
  0x13   :  { %s611_s26 = smov 0  }
  0x14 LB: > { %s334_s27 = sadd.s32 4294967295, %s552_s26   ;;  %s335_s28 = sadd.s32 4294967294, %s552_s26   ;;  %s552_s26 = sphi %s611_s26, %s22_s26   ;;  %s548_s25 = sphi %s609_s25, %s779_s25   ;;  %s544_s0 = sphi %s607_s0, %s778_s0   ;;  %s540_s24 = sphi %s605_s24, %s777_s24   ;;  %s536_s23 = sphi %s603_s23, %s776_s23   ;;  %s532_s22 = sphi %s601_s22, %s775_s22   ;;  %s528_s21 = sphi %s599_s21, %s774_s21   ;;  %s524_s20 = sphi %s597_s20, %s773_s20   ;;  %s520_s19 = sphi %s595_s19, %s772_s19  }
  0x15   : > { %s34_s29 = sadd.s32 1, %s548_s25  ;;  %s38_s30 = sld [smem:[#allocation3 + %s548_s25]] }
  0x16   : > { %p36_p3 = scmp.ge.s32.totalorder %s34_s29, 8  ;;  %s45_s3 = sadd.s32 1, %s540_s24 }
  0x17   : > { %p52_p4 = scmp.ne.s32.totalorder %s540_s24, %s536_s23  ;;  %p53_p5 = scmp.eq.s32.totalorder %s552_s26, 0 }
  0x18   : > { %s781_s29 = smov (%p36_p3, %s34_s29), 0  ;;  %p58_p7 = scmp.ne.s32.totalorder %s536_s23, %s532_s22 }
  0x19   : > { %766 = sst [smem:[#allocation17_spill]] %s781_s29  ;;  %p648_p6 = por %p53_p5, %p52_p4 }
  0x1a   : > { %s39_s5 = sld [smem:[#allocation3 + %s781_s29]]  ;;  %p59_p8 = scmp.eq.s32.totalorder %s334_s27, 0 }
  0x1b   : > { %s68_s6 = ssub.s32 %s548_s25, %s781_s29  ;;  %s73_s7 = sadd.s32 1, %s528_s21 }
  0x1c   : > { %p657_p9 = por %p59_p8, %p58_p7  ;;  %p71_p10 = scmp.eq.s32.totalorder %s68_s6, 0 }
  0x1d   : > { %p83_p11 = scmp.ne.s32.totalorder %s528_s21, %s524_s20  ;;  %p84_p12 = scmp.eq.s32.totalorder %s334_s27, 7 }
  0x1e   : > { %s664_s9 = scalar_select %p71_p10, %s528_s21, %s73_s7  }
  0x1f   : > { %p666_p13 = por %p84_p12, %p83_p11  ;;  %p89_p0 = scmp.ne.s32.totalorder %s524_s20, %s520_s19 }
  0x20   : > { %s40_s11 = ssub.s32 %s38_s30, %s39_s5  ;;  %p90_p1 = scmp.eq.s32.totalorder %s335_s28, 7 }
  0x21   : > { %p43_p2 = scmp.eq.s32.totalorder %s40_s11, 0  ;;  %p337_p4 = scmp.ge.s32.totalorder %s552_s26, 8 }
  0x22   : > { %p672_p3 = por %p90_p1, %p89_p0 }
  0x23   : > { %s677_s13 = scalar_select %p43_p2, %s540_s24, %s45_s3  }
  0x24   : > { %106 = sbr.rel (%p337_p4) target bundleno = 59 (0x3b), region = 16 }
  0x2b   : > { %s110_s14 = sand.u32 1, %s540_s24   ;;  %s555_s17 = smov 4096  }
  0x2c   : > { %s349_s15 = smul.u32 48, %s110_s14  ;;  %355 = sst [smem:[#allocation9]] (%p648_p6), %s555_s17 }
  0x2d   : > { %s352_s16 = scalar_select %p648_p6, [#allocation3], [#allocation12] }
  0x2e   : > { %s353_s18 = scalar_select %p648_p6, %s548_s25, 0 }
  0x2f   : > { %s354_s22 = scalar_select %p648_p6, [#allocation0], [#allocation13] }
  0x30   : > { %s115_s27 = sld [smem:[%s352_s16 + %s353_s18]]  ;;  %s114_s28 = scalar_lea.vmem [#allocation4], %s349_s15 }
  0x31   : > { %s136_s30 = sshll.u32 %s114_s28, 4  ;;  %s128_s3 = sld [smem:[%s354_s22]]   ;;  %s137_s30 = int_to_ptr.vmem [resolvable:$true] %s136_s30 }
  0x32   : > { %s556_s5 = smov 256   ;;  %s557_s6 = smov 2  }
  0x33   : > { %356 = sst [smem:[#allocation9 + $0x1]] (%p648_p6), %s556_s5  ;;  %s558_s7 = smov 128  }
  0x34   : > { %357 = sst [smem:[#allocation9 + $0x2]] (%p648_p6), %s557_s6  ;;  %s559_s28 = smov 8  }
  0x35   : > { %358 = sst [smem:[#allocation9 + $0x3]] (%p648_p6), %s558_s7  ;;  %s111_s29 = scalar_lea.sflag [#allocation5], %s110_s14 }
  0x36   : > { %s347_s11 = sshll.u32 %s115_s27, 8  ;;  %359 = sst [smem:[#allocation9 + $0x4]] (%p648_p6), %s558_s7 }
  0x37   : > { %s123_s15 = scalar_lea.hbm %s763_s1, %s347_s11  ;;  %s340_s18 = sshll.u32 %s128_s3, 26 }
  0x38   : > { %s341_s22 = sadd.s32 134217728, %s340_s18  ;;  %360 = sst [smem:[#allocation9 + $0x5]] (%p648_p6), %s559_s28 }
  0x39   : > { %s560_s5 = smov [#allocation8]  }
  0x3a   : > { %361 = dma.general (%p648_p6), %s123_s15, 768, %s137_s30, %s111_s29, %s560_s5, [#allocation9], %s341_s22, 0  }
  0x3b PF: > { %p342_p5 = scmp.ge.s32.totalorder %s552_s26, 1  ;;  %p157_p7 = scmp.lt.s32.totalorder %s552_s26, 9 }
  0x3d   : > { %p158_p8 = pnand %p342_p5, %p157_p7 }
  0x3e   : > { %s163_s27 = sand.u32 (!%p158_p8), 1, %s536_s23  }
  0x3f   : > { %161 = sbr.rel (%p158_p8) target bundleno = 87 (0x57), region = 24  ;;  %s164_s3 = scalar_lea.sflag (!%p158_p8), [#allocation5], %s163_s27 }
  0x40   : > { %s350_s6 = smul.u32 (!%p158_p8), 48, %s163_s27 }
  0x42   : > { %s167_s7 = scalar_lea.vmem (!%p158_p8), [#allocation4], %s350_s6 }
  0x46   : > { %511 = dma.done.wait (%p657_p9), %s164_s3, 768  }
  0x47   : > { %513 = vsyncadd (%p657_p9), %s164_s3, 4294966528  ;;  %s183_s29 = sand.u32 1, %s524_s20   ;;  %vm195_vm0 = vcmask 130048   ;;  %v189_v0 = vld [vmem:[%s167_s7] sm:$0xff]  ;;  %v190_v1 = vld [vmem:[%s167_s7 + $0x8] sm:$0xff] }
  0x48   : > { %s351_s4 = smul.u32 48, %s183_s29  ;;  %v191_v2 = vld [vmem:[%s167_s7 + $0x10] sm:$0xff]  ;;  %v192_v3 = vld [vmem:[%s167_s7 + $0x18] sm:$0xff]  ;;  %v193_v4 = vld [vmem:[%s167_s7 + $0x20] sm:$0xff]  ;;  %s203_s30 = scalar_lea.sflag [#allocation6], %s183_s29 }
  0x49   : > { %v194_v5 = vld [vmem:[%s167_s7 + $0x28] sm:$0xff] }
  0x4a   : > { %s185_s14 = scalar_lea.vmem [#allocation7], %s351_s4 }
  0x4b   : > { %196 = vst.msk [vmem:[%s185_s14] sm:$0xff] %vm195_vm0, %v189_v0  ;;  %197 = vst.msk [vmem:[%s185_s14 + $0x8] sm:$0xff] %vm195_vm0, %v190_v1 }
  0x4c   : > { %198 = vst.msk [vmem:[%s185_s14 + $0x10] sm:$0xff] %vm195_vm0, %v191_v2  ;;  %199 = vst.msk [vmem:[%s185_s14 + $0x18] sm:$0xff] %vm195_vm0, %v192_v3 }
  0x4d   : > { %200 = vst.msk [vmem:[%s185_s14 + $0x20] sm:$0xff] %vm195_vm0, %v193_v4  ;;  %201 = vst.msk [vmem:[%s185_s14 + $0x28] sm:$0xff] %vm195_vm0, %v194_v5 }
  0x4e   : > { %s348_s8 = sshll.u32 %s544_s0, 8  ;;  %s234_s11 = sshll.u32 %s185_s14, 4  ;;  %s235_s11 = int_to_ptr.vmem [resolvable:$true] %s234_s11 }
  0x4f   : > { %s217_s15 = scalar_lea.hbm %s764_s2, %s348_s8  ;;  %s561_s18 = smov 256  }
  0x50   : > { %363 = sst [smem:[#allocation11]] (%p666_p13), %s561_s18  ;;  %s562_s22 = smov 2048  }
  0x51   : > { %364 = sst [smem:[#allocation11 + $0x1]] (%p666_p13), %s562_s22  ;;  %s563_s28 = smov 2  }
  0x52   : > { %365 = sst [smem:[#allocation11 + $0x2]] (%p666_p13), %s563_s28  ;;  %s564_s5 = smov 128  }
  0x53   : > { %366 = sst [smem:[#allocation11 + $0x3]] (%p666_p13), %s564_s5  ;;  %s565_s0 = smov 8  }
  0x54   : > { %367 = sst [smem:[#allocation11 + $0x4]] (%p666_p13), %s564_s5  ;;  %s566_s27 = smov [#allocation10]  }
  0x55   : > { %368 = sst [smem:[#allocation11 + $0x5]] (%p666_p13), %s565_s0  ;;  %s567_s6 = smov 0  }
  0x56   : > { %369 = dma.general (%p666_p13), %s235_s11, 768, %s217_s15, %s203_s30, %s566_s27, [#allocation11], %s567_s6, 0  }
  0x57 PF: > { %p375_p6 = scmp.ge.s32.totalorder %s552_s26, 2  ;;  %s262_s3 = sand.u32 1, %s520_s19  }
  0x58   : > { %s263_s7 = scalar_lea.sflag [#allocation6], %s262_s3 }
  0x59   : > { %p372_p9 = pnand %p375_p6, %p672_p3 }
  0x5b   : > { %515 = dma.done.wait (!%p372_p9), %s263_s7, 768  }
  0x5c   : > { %517 = vsyncadd (!%p372_p9), %s263_s7, 4294966528  ;;  %s22_s26 = sadd.s32 1, %s552_s26   ;;  %s771_s10 = sld [smem:[#allocation17_spill]] }
  0x5d   : > { %p19_p10 = scmp.ge.s32.totalorder %s22_s26, 10   ;;  %s772_s19 = smov %s524_s20 }
  0x5e   : > { %s773_s20 = smov %s528_s21  ;;  %s774_s21 = smov %s664_s9 }
  0x5f   : > { %s775_s22 = smov %s536_s23  ;;  %s776_s23 = smov %s540_s24 }
  0x60   : > { %s777_s24 = smov %s677_s13  ;;  %s778_s0 = smov %s548_s25 }
  0x61   :  { %21 = sbr.rel (!%p19_p10) target bundleno = 20 (0x14), region = 79 }
  0x62   : > { %s779_s25 = smov %s771_s10 }
  0x68   :  { %268 = vsyncpa [#allocation5], 1 }
  0x69   :  { %270 = vsyncpa [#allocation5 + $0x1], 1 }
  0x6a   :  { %271 = vsyncpa [#allocation6], 1 }
  0x6b   :  { %273 = vsyncpa [#allocation6 + $0x1], 1 }

</bundles_post_ra>
